<compile_context>
chip_gen: v5e
topology: v5e:2x2
jax: 0.10.0
libtpu: 0.0.40
codegen_flags: <defaults>
</compile_context>

<pallas_src>
import jax
import jax.numpy as jnp
from jax.experimental import pallas as pl
from jax.experimental.pallas import tpu as pltpu


def _pointwise1x1_kernel(w_ref, x_ref, o_ref):
    """out = w @ x on one (C, T) spatial tile of one image.

    w_ref: (Cout, C)   folded (pointwise * depthwise) 1x1 weights
    x_ref: (1, C, T)   input tile, T spatial positions on lanes
    o_ref: (1, Cout, T)
    """
    z = jnp.dot(w_ref[...], x_ref[0], preferred_element_type=jnp.float32)
    o_ref[0] = z.astype(o_ref.dtype)


def heatmap_weighting_forward(x_nchw, w_dw=None, w_pw=None, *, max_tile=32768):
    """Forward pass of HeatmapWeighting.

    x_nchw: (N, C, H, W); w_dw: (C,) depthwise 1x1 weights; w_pw: (Cout, C)
    pointwise 1x1 weights.  With the module's fixed weights (call with
    w_dw=None, w_pw=None) the op is exactly the identity and no kernel runs.
    """
    N, C, H, W = x_nchw.shape

    if w_dw is None and w_pw is None:
        # ones depthwise + identity pointwise == identity: fastest kernel is none.
        return x_nchw

    # Fold the depthwise scale into the pointwise matrix (mathematically identical).
    if w_pw is None:
        w = jnp.diag(w_dw)
    elif w_dw is None:
        w = w_pw
    else:
        w = w_pw * w_dw[None, :]
    Cout = w.shape[0]
    w = w.astype(x_nchw.dtype)          # tiny tensor; keeps the MXU in x's dtype

    HW = H * W
    x3 = x_nchw.reshape(N, C, HW)       # free reshape: spatial axis on lanes

    # --- lane-tile selection (all static Python ints) ------------------------
    LANES = 128
    itemsize = jnp.dtype(x_nchw.dtype).itemsize
    if HW <= LANES:
        T = HW                                        # full-dim block (always legal)
    else:
        units = max(1, min(HW // LANES, max_tile // LANES))   # T <= HW, multiple of 128
        # Keep double-buffered in+out block footprint well under scoped VMEM.
        per_unit_bytes = 2 * (C + Cout) * LANES * itemsize
        units = max(1, min(units, (16 * 1024 * 1024) // per_unit_bytes))
        # v7x megacore: ensure >= 2 total grid steps when possible.
        hw_units = -(-HW // LANES)
        if N * (-(-hw_units // units)) < 2:
            units = max(1, hw_units // 2)
        T = units * LANES
    grid_hw = -(-HW // T)                             # partial last block handled by Pallas

    out = pl.pallas_call(
        _pointwise1x1_kernel,
        out_shape=jax.ShapeDtypeStruct((N, Cout, HW), x_nchw.dtype),
        grid=(N, grid_hw),
        in_specs=[
            pl.BlockSpec((Cout, C), lambda n, j: (0, 0)),
            pl.BlockSpec((1, C, T), lambda n, j: (n, 0, j)),
        ],
        out_specs=pl.BlockSpec((1, Cout, T), lambda n, j: (n, 0, j)),
        compiler_params=pltpu.CompilerParams(
            dimension_semantics=("parallel", "parallel"),
            vmem_limit_bytes=32 * 1024 * 1024,
        ),
    )(w, x3)

    return out.reshape(N, Cout, H, W)


def make_heatmap_weighting_params(num_filters):
    """The module's fixed custom weights: depthwise ones, pointwise identity."""
    w1 = jnp.ones((num_filters, 1, 1, 1), jnp.float32)               # (C,1,kh,kw)
    w2 = jnp.eye(num_filters, dtype=jnp.float32)[:, :, None, None]   # (C,C,1,1)
    w_dw = w1[:, 0, 0, 0]                                            # (C,)
    w_pw = w2[:, :, 0, 0]                                            # (Cout, Cin)
    return w_dw, w_pw


if __name__ == "__main__":
    key = jax.random.PRNGKey(0)
    N, C, H, W = 2, 16, 32, 32            # heatmap stack: 16 joints, 32x32 maps
    x = jax.random.normal(key, (N, C, H, W), jnp.float32)

    fwd = jax.jit(heatmap_weighting_forward)

    # 1) Module's fixed weights routed through the Pallas kernel: exact identity.
    w_dw, w_pw = make_heatmap_weighting_params(C)
    y = jax.block_until_ready(fwd(x, w_dw, w_pw))
    assert y.shape == (N, C, H, W), y.shape
    assert bool(jnp.all(jnp.isfinite(y)))
    assert bool(jnp.allclose(y, x, atol=1e-5, rtol=1e-5))

    # 2) Default call takes the identity fast path (no kernel launched at all).
    y_fast = jax.block_until_ready(jax.jit(lambda a: heatmap_weighting_forward(a))(x))
    assert bool(jnp.allclose(y_fast, x))

    # 3) General separable-1x1 math with non-trivial weights vs pure JAX.
    k1, k2 = jax.random.split(jax.random.fold_in(key, 1))
    wd = jax.random.normal(k1, (C,), jnp.float32)
    wp = jax.random.normal(k2, (C, C), jnp.float32)
    y2 = jax.block_until_ready(fwd(x, wd, wp))
    ref = jnp.einsum("oc,nchw->nohw", wp, x * wd[None, :, None, None])
    assert bool(jnp.allclose(y2, ref, atol=1e-4, rtol=1e-4))

    # 4) bf16 end-to-end (no wrapper-side up/down casts); identity weights stay exact.
    xb = x.astype(jnp.bfloat16)
    yb = jax.block_until_ready(fwd(xb, w_dw, w_pw))
    assert yb.dtype == jnp.bfloat16
    assert bool(jnp.array_equal(yb, xb))

    print("KERNEL_OK")
</pallas_src>

<mosaic_0001>
module attributes {stable_mosaic.version = 11 : i64} {
  func.func @_pointwise1x1_kernel(%arg0: i32, %arg1: i32, %arg2: memref<16x16xf32, #tpu.memory_space<vmem>>, %arg3: memref<1x16x1024xf32, #tpu.memory_space<vmem>>, %arg4: memref<1x16x1024xf32, #tpu.memory_space<vmem>>) attributes {dimension_semantics = [#tpu.dimension_semantics<parallel>, #tpu.dimension_semantics<parallel>], iteration_bounds = array<i64: 2, 1>, scalar_prefetch = 0 : i64, scratch_operands = 0 : i64, tpu.core_type = #tpu.core_type<tc>, window_params = [{pipeline_mode = #tpu.pipeline_mode<synchronous>, transform_indices = @transform_0, window_bounds = array<i64: 16, 16>}, {transform_indices = @transform_1, window_bounds = array<i64: 1, 16, 1024>}, {transform_indices = @transform_2, window_bounds = array<i64: 1, 16, 1024>}]} {
    %c0 = arith.constant 0 : index
    %c0_0 = arith.constant 0 : index
    %0 = vector.load %arg2[%c0, %c0_0] : memref<16x16xf32, #tpu.memory_space<vmem>>, vector<16x16xf32>
    %c0_1 = arith.constant 0 : index
    %c0_2 = arith.constant 0 : index
    %c0_3 = arith.constant 0 : index
    %1 = vector.load %arg3[%c0_1, %c0_2, %c0_3] : memref<1x16x1024xf32, #tpu.memory_space<vmem>>, vector<1x16x1024xf32>
    %2 = vector.shape_cast %1 : vector<1x16x1024xf32> to vector<16x1024xf32>
    %cst = arith.constant dense<0.000000e+00> : vector<16x1024xf32>
    %3 = tpu.matmul %0, %2, %cst {dimension_numbers = #tpu.dot_dimension_numbers<[1], [0], [0], [1], [0, 0, 1, 1], [], []>} : vector<16x16xf32>, vector<16x1024xf32>, vector<16x1024xf32> -> vector<16x1024xf32>
    %c0_4 = arith.constant 0 : index
    %c0_5 = arith.constant 0 : index
    %c0_6 = arith.constant 0 : index
    %4 = vector.load %arg4[%c0_4, %c0_5, %c0_6] : memref<1x16x1024xf32, #tpu.memory_space<vmem>>, vector<1x16x1024xf32>
    %5 = vector.shape_cast %4 : vector<1x16x1024xf32> to vector<16x1024xf32>
    %6 = vector.shape_cast %3 : vector<16x1024xf32> to vector<1x16x1024xf32>
    tpu.vector_store %arg4[%c0_4, %c0_5, %c0_6], %6 {strides = array<i32>} : memref<1x16x1024xf32, #tpu.memory_space<vmem>>, vector<1x16x1024xf32>,
    return
  }
  func.func @transform_0(%arg0: i32, %arg1: i32) -> (i32, i32) {
    %c0_i32 = arith.constant 0 : i32
    %c0_i32_0 = arith.constant 0 : i32
    %c0_i32_1 = arith.constant 0 : i32
    return %c0_i32, %c0_i32_0 : i32, i32
  }
  func.func @transform_1(%arg0: i32, %arg1: i32) -> (i32, i32, i32) {
    %c0_i32 = arith.constant 0 : i32
    %c0_i32_0 = arith.constant 0 : i32
    return %arg0, %c0_i32, %arg1 : i32, i32, i32
  }
  func.func @transform_2(%arg0: i32, %arg1: i32) -> (i32, i32, i32) {
    %c0_i32 = arith.constant 0 : i32
    %c0_i32_0 = arith.constant 0 : i32
    return %arg0, %c0_i32, %arg1 : i32, i32, i32
  }
}

</mosaic_0001>

<bundles_post_ra>
// kernel: heatmap_weighting_forward.1
= control target key start
LH: loop header
LB: loop body
LE: loop exit
PB: predicated region body
PF: predicated region fallthrough
CT: control target
= control target key end

     0   :  { %s587_s9 = smov 0   ;;  %s589_s10 = smov 0   ;;  %s685_s0 = inlined_call_operand.vmem [shape: f32[16,16], index: 0, kind: input, shape index: {}]   ;;  %s686_s1 = inlined_call_operand.vmem [shape: f32[2,16,1024], index: 1, kind: input, shape index: {}]   ;;  %s687_s2 = inlined_call_operand.vmem [shape: f32[2,16,1024], index: 2, kind: output, shape index: {}]  }
   0x1   :  { %s591_s11 = smov 0  }
   0x2 LB: > { %s24_s12 = sadd.s32 1, %s566_s10  ;;  %p499_p0 = scmp.ge.s32.totalorder %s570_s11, 1  ;;  %s570_s11 = sphi %s591_s11, %s12_s11   ;;  %s566_s10 = sphi %s589_s10, %s689_s10   ;;  %s562_s9 = sphi %s587_s9, %s688_s9  }
   0x3   : > { %p26_p1 = scmp.ge.s32.totalorder %s24_s12, 2  ;;  %p133_p2 = scmp.lt.s32.totalorder %s570_s11, 3 }
   0x5   : > { %s691_s12 = smov (%p26_p1, %s24_s12), 0  ;;  %p134_p3 = pnand %p499_p0, %p133_p2 }
   0x6   : > { %p164_p4 = scmp.lt.s32.totalorder (!%p134_p3), %s562_s9, 1 }
   0x7   : > { %137 = sbr.rel (%p134_p3) target bundleno = 177 (0xb1), region = 28 }
   0xc   : > { %s693_s9 = smov (!%p164_p4, %s562_s9), 1  ;;  %v183_v4 = vld [vmem:[%s685_s0] sm:$0xff]  ;;  %vm201_vm0 = vcmask 130048   ;;  %v184_v15 = vld [vmem:[%s685_s0 + $0x8] sm:$0xff] }
   0xd   : > { %s522_s13 = sshll.u32 %s693_s9, 7 }
   0xe   : > { %s613_s16 = scalar_lea.vmem %s686_s1, %s522_s13  ;;  %s658_s23 = scalar_lea.vmem %s687_s2, %s522_s13 }
   0xf   : > { %v195_v0 = vld [vmem:[%s613_s16 + $0x50] sm:$0xff]  ;;  %v196_v1 = vld [vmem:[%s613_s16 + $0x58] sm:$0xff]  ;;  %v193_v7 = vld [vmem:[%s613_s16 + $0x40] sm:$0xff] }
  0x10   : > { %v187_v2 = vld [vmem:[%s613_s16 + $0x10] sm:$0xff]  ;;  %268 = vmatpush.msra.mxu2 %v195_v0  ;;  %291 = vmatpush.msra.mxu3 %v196_v1  ;;  %v188_v3 = vld [vmem:[%s613_s16 + $0x18] sm:$0xff]  ;;  %v194_v8 = vld [vmem:[%s613_s16 + $0x48] sm:$0xff] }
  0x11   : > { %v199_v5 = vld [vmem:[%s613_s16 + $0x70] sm:$0xff]  ;;  %v200_v6 = vld [vmem:[%s613_s16 + $0x78] sm:$0xff]  ;;  %v185_v11 = vld [vmem:[%s613_s16] sm:$0xff]  ;;  %222 = vmatpush.msra.mxu0 %v193_v7  ;;  %245 = vmatpush.msra.mxu1 %v194_v8 }
  0x12   : > { %269 = vmatpush.msra.mxu2 %v187_v2  ;;  %292 = vmatpush.msra.mxu3 %v188_v3  ;;  %v191_v9 = vld [vmem:[%s613_s16 + $0x30] sm:$0xff]  ;;  %v192_v10 = vld [vmem:[%s613_s16 + $0x38] sm:$0xff]  ;;  %v186_v12 = vld [vmem:[%s613_s16 + $0x8] sm:$0xff] }
  0x13   : > { %508 = vmatmul.msk.f32.vlgmr.msra.gmra.mxu2 %vm201_vm0, %v183_v4  ;;  %510 = vmatmul.msk.f32.vlgmr.msra.gmra.mxu3 %vm201_vm0, %v183_v4  ;;  %v197_v13 = vld [vmem:[%s613_s16 + $0x60] sm:$0xff]  ;;  %v198_v14 = vld [vmem:[%s613_s16 + $0x68] sm:$0xff] }
  0x14   : > { %360 = vmatpush.msrb.mxu2 %v199_v5  ;;  %383 = vmatpush.msrb.mxu3 %v200_v6  ;;  %v189_v16 = vld [vmem:[%s613_s16 + $0x20] sm:$0xff]  ;;  %v190_v17 = vld [vmem:[%s613_s16 + $0x28] sm:$0xff] }
  0x15   : > { %223 = vmatpush.msra.mxu0 %v185_v11  ;;  %246 = vmatpush.msra.mxu1 %v186_v12 }
  0x16   : > { %361 = vmatpush.msrb.mxu2 %v191_v9  ;;  %384 = vmatpush.msrb.mxu3 %v192_v10 }
  0x17   : > { %504 = vmatmul.msk.f32.vlgmr.msra.gmra.mxu0 %vm201_vm0, %v183_v4  ;;  %506 = vmatmul.msk.f32.vlgmr.msra.gmra.mxu1 %vm201_vm0, %v183_v4 }
  0x18   : > { %314 = vmatpush.msrb.mxu0 %v197_v13  ;;  %337 = vmatpush.msrb.mxu1 %v198_v14 }
  0x1a   : > { %315 = vmatpush.msrb.mxu0 %v189_v16  ;;  %338 = vmatpush.msrb.mxu1 %v190_v17 }
  0x1b   : > { %509 = vmatmul.msk.f32.gmra.mxu2 %vm201_vm0, %v184_v15  ;;  %511 = vmatmul.msk.f32.gmra.mxu3 %vm201_vm0, %v184_v15 }
  0x1f   : > { %505 = vmatmul.msk.f32.gmra.mxu0 %vm201_vm0, %v184_v15  ;;  %507 = vmatmul.msk.f32.gmra.mxu1 %vm201_vm0, %v184_v15 }
  0x23   : > { %516 = vmatmul.msk.f32.vlgmr.msrb.gmra.mxu2 %vm201_vm0, %v183_v4  ;;  %518 = vmatmul.msk.f32.vlgmr.msrb.gmra.mxu3 %vm201_vm0, %v183_v4 }
  0x27   : > { %512 = vmatmul.msk.f32.vlgmr.msrb.gmra.mxu0 %vm201_vm0, %v183_v4  ;;  %514 = vmatmul.msk.f32.vlgmr.msrb.gmra.mxu1 %vm201_vm0, %v183_v4 }
  0x2b   : > { %517 = vmatmul.msk.f32.gmra.mxu2 %vm201_vm0, %v184_v15  ;;  %519 = vmatmul.msk.f32.gmra.mxu3 %vm201_vm0, %v184_v15 }
  0x2f   : > { %513 = vmatmul.msk.f32.gmra.mxu0 %vm201_vm0, %v184_v15  ;;  %515 = vmatmul.msk.f32.gmra.mxu1 %vm201_vm0, %v184_v15 }
  0x94   : > { %v225_v18 = vpop.f32.mrf.mxu0  ;;  %v248_v19 = vpop.f32.mrf.mxu1 }
  0x95   : > { %392 = vst [vmem:[%s658_s23] sm:$0xff] %v225_v18 }
  0x96   : > { %v271_v20 = vpop.f32.mrf.mxu2  ;;  %v294_v21 = vpop.f32.mrf.mxu3  ;;  %393 = vst [vmem:[%s658_s23 + $0x8] sm:$0xff] %v248_v19 }
  0x97   : > { %394 = vst [vmem:[%s658_s23 + $0x10] sm:$0xff] %v271_v20 }
  0x98   : > { %395 = vst [vmem:[%s658_s23 + $0x18] sm:$0xff] %v294_v21 }
  0x9c   : > { %v228_v22 = vpop.f32.mrf.mxu0  ;;  %v251_v23 = vpop.f32.mrf.mxu1 }
  0x9d   : > { %400 = vst [vmem:[%s658_s23 + $0x40] sm:$0xff] %v228_v22 }
  0x9e   : > { %v274_v24 = vpop.f32.mrf.mxu2  ;;  %v297_v25 = vpop.f32.mrf.mxu3  ;;  %401 = vst [vmem:[%s658_s23 + $0x48] sm:$0xff] %v251_v23 }
  0x9f   : > { %402 = vst [vmem:[%s658_s23 + $0x50] sm:$0xff] %v274_v24 }
  0xa0   : > { %403 = vst [vmem:[%s658_s23 + $0x58] sm:$0xff] %v297_v25 }
  0xa4   : > { %v317_v26 = vpop.f32.mrf.mxu0  ;;  %v340_v27 = vpop.f32.mrf.mxu1 }
  0xa5   : > { %396 = vst [vmem:[%s658_s23 + $0x20] sm:$0xff] %v317_v26 }
  0xa6   : > { %v363_v28 = vpop.f32.mrf.mxu2  ;;  %v386_v29 = vpop.f32.mrf.mxu3  ;;  %397 = vst [vmem:[%s658_s23 + $0x28] sm:$0xff] %v340_v27 }
  0xa7   : > { %398 = vst [vmem:[%s658_s23 + $0x30] sm:$0xff] %v363_v28 }
  0xa8   : > { %399 = vst [vmem:[%s658_s23 + $0x38] sm:$0xff] %v386_v29 }
  0xac   : > { %v320_v30 = vpop.f32.mrf.mxu0  ;;  %v343_v31 = vpop.f32.mrf.mxu1 }
  0xad   : > { %404 = vst [vmem:[%s658_s23 + $0x60] sm:$0xff] %v320_v30 }
  0xae   : > { %v366_v32 = vpop.f32.mrf.mxu2  ;;  %v389_v33 = vpop.f32.mrf.mxu3  ;;  %405 = vst [vmem:[%s658_s23 + $0x68] sm:$0xff] %v343_v31 }
  0xaf   : > { %406 = vst [vmem:[%s658_s23 + $0x70] sm:$0xff] %v366_v32 }
  0xb0   : > { %407 = vst [vmem:[%s658_s23 + $0x78] sm:$0xff] %v389_v33 }
  0xb1 PF: > { %s12_s11 = sadd.s32 1, %s570_s11   ;;  %s688_s9 = smov %s566_s10 }
  0xb2   : > { %p9_p5 = scmp.ge.s32.totalorder %s12_s11, 4   ;;  %s689_s10 = smov %s691_s12 }
  0xb4   :  { %11 = sbr.rel (!%p9_p5) target bundleno = 2 (0x2), region = 58 }

</bundles_post_ra>
